<compile_context>
chip_gen: v7x
topology: tpu7x:2x2x1
jax: 0.10.0
libtpu: 0.0.40
codegen_flags: <defaults>
</compile_context>

<pallas_src>
import functools

import numpy as np
import jax
import jax.numpy as jnp
from jax import lax
from jax.experimental import pallas as pl
from jax.experimental.pallas import tpu as pltpu

WORD_DIM = 128          # inner width of nn.Embedding(vocab, 128) — fixed by the module
LN_EPS = 1e-12

# Conservative budgets so the same tiling works on v5e/v6e (128 MiB physical VMEM)
# and v7x (64 MiB physical VMEM).
VMEM_WORKING_SET_BUDGET = 24 * 1024 * 1024
VMEM_LIMIT_BYTES = 48 * 1024 * 1024


def embeddings_kernel(ids_smem, *refs, has_pos_ids):
    """One grid step processes TT = TB * S tokens.

    ids_smem : (N,) int32 token ids in SMEM (scalar prefetch) -> drives the HBM row gather.
    refs (in order):
      seg_ref    : (TT, 1) int32 segment ids
      default  path: pe_ref    : (TT, H) f32 tile-invariant position slab
      explicit path: posid_ref : (TT, 1) int32 ; postab_ref : (P, H) f32
      w2_ref     : (128, H) f32   projection weights (resident)
      ttab_ref   : (3, H)  f32    type-embedding table (resident)
      gamma_ref, beta_ref : (1, H) f32
      word_hbm   : (V, 128) f32 word-embedding table, left in HBM (pl.ANY)
      out_ref    : (TT, H) f32
      gbuf       : VMEM (2, TT, 128) f32  double-buffered gather scratch
      sem        : DMA semaphores (2,)
    """
    if has_pos_ids:
        (seg_ref, posid_ref, postab_ref, w2_ref, ttab_ref, gamma_ref, beta_ref,
         word_hbm, out_ref, gbuf, sem) = refs
    else:
        (seg_ref, pe_ref, w2_ref, ttab_ref, gamma_ref, beta_ref,
         word_hbm, out_ref, gbuf, sem) = refs

    i = pl.program_id(0)
    nt = pl.num_programs(0)
    TT = gbuf.shape[1]

    # ---- word-embedding row gather from HBM, double-buffered across grid steps.
    def start_gather(tile, slot):
        base = tile * TT

        def issue(t, carry):
            row = ids_smem[base + t]
            pltpu.make_async_copy(word_hbm.at[pl.ds(row, 1)],
                                  gbuf.at[slot, pl.ds(t, 1)],
                                  sem.at[slot]).start()
            return carry

        lax.fori_loop(0, TT, issue, 0)

    def wait_gather(slot):
        def drain(t, carry):
            pltpu.make_async_copy(word_hbm.at[pl.ds(0, 1)],
                                  gbuf.at[slot, pl.ds(t, 1)],
                                  sem.at[slot]).wait()
            return carry

        lax.fori_loop(0, TT, drain, 0)

    slot = i % 2

    @pl.when(i == 0)
    def _():                       # prime the pipeline with the first tile
        start_gather(0, 0)

    @pl.when(i + 1 < nt)
    def _():                       # prefetch next tile's rows; overlaps this tile's compute
        start_gather(i + 1, 1 - slot)

    wait_gather(slot)

    # ---- 128 -> H projection (word_embeddings_2, no bias): one MXU matmul per tile.
    words = gbuf[slot]                                        # (TT, 128) f32
    we = jnp.dot(words, w2_ref[...], preferred_element_type=jnp.float32)

    # ---- position embeddings.
    if has_pos_ids:
        P = postab_ref.shape[0]
        pid = posid_ref[...]                                  # (TT, 1) int32
        onehot = (pid == lax.broadcasted_iota(jnp.int32, (pid.shape[0], P), 1)
                  ).astype(jnp.float32)                       # exact 0/1, P is small
        pe = jnp.dot(onehot, postab_ref[...], preferred_element_type=jnp.float32)
    else:
        pe = pe_ref[...]                                      # (TT, H) broadcast-add slab

    # ---- type embeddings: K=3 gather as two VPU selects (no padded MXU matmul).
    # NOTE: segment ids outside {0,1,2} map to row 2; nn.Embedding(3, H) requires
    # valid ids anyway, so this matches the reference for all legal inputs.
    seg = seg_ref[...]                                        # (TT, 1) int32
    ttab = ttab_ref[...]                                      # (3, H)
    te = jnp.where(seg == 0, ttab[0][None, :],
                   jnp.where(seg == 1, ttab[1][None, :], ttab[2][None, :]))

    # ---- LayerNorm(eps=1e-12): hoisted (x - mean), rsqrt on EUP, fused affine.
    x = we + pe + te
    mean = jnp.mean(x, axis=-1, keepdims=True)
    xc = x - mean
    var = jnp.mean(xc * xc, axis=-1, keepdims=True)
    inv = lax.rsqrt(var + LN_EPS)
    out_ref[...] = xc * (inv * gamma_ref[...]) + beta_ref[...]
    # TODO(synk): dropout omitted (eval-mode identity; training RNG mask not implemented).


def _pick_batch_tile(B, S, H, vmem_budget_bytes):
    """Largest batch tile TB (divisor of B) whose per-tile VMEM working set fits
    the budget; prefer >= 2 grid steps so the manual gather prefetch overlaps."""
    N = B * S

    def tile_bytes(tb):
        tt = tb * S
        gather = 2 * tt * WORD_DIM * 4          # double-buffered row-gather scratch
        out2 = 2 * tt * H * 4                   # pipelined output blocks
        ints = 2 * 2 * tt * 128 * 4             # seg (+pos id) int blocks, lane padded
        pe = 2 * tt * H * 4                     # default-path position slab (worst case)
        w2 = 2 * WORD_DIM * H * 4
        misc = 1 << 20
        return gather + out2 + ints + pe + w2 + misc

    cands = [tb for tb in range(1, B + 1)
             if B % tb == 0 and ((tb * S) % 8 == 0 or tb * S == N)]
    fitting = [tb for tb in cands if tile_bytes(tb) <= vmem_budget_bytes] or [min(cands)]
    multi = [tb for tb in fitting if B // tb >= 2]
    return max(multi) if multi else max(fitting)


def embeddings_forward(input_ids, segment_ids, params, position_ids=None):
    """Pallas forward of MEVF Embeddings (eval mode: dropout == identity)."""
    B, S = input_ids.shape
    word_table = params["word_table"].astype(jnp.float32)     # (V, 128), row 0 zeros (padding_idx)
    w2 = params["w2"].astype(jnp.float32)                     # (128, H)
    pos_table = params["pos_table"].astype(jnp.float32)       # (P, H)
    type_table = params["type_table"].astype(jnp.float32)     # (3, H)
    E = word_table.shape[1]
    H = w2.shape[1]
    P = pos_table.shape[0]
    N = B * S

    TB = _pick_batch_tile(B, S, H, VMEM_WORKING_SET_BUDGET)
    TT = TB * S
    num_tiles = N // TT

    ids_flat = input_ids.reshape(N).astype(jnp.int32)
    seg2d = segment_ids.reshape(N, 1).astype(jnp.int32)
    gamma2d = params["gamma"].reshape(1, H).astype(jnp.float32)
    beta2d = params["beta"].reshape(1, H).astype(jnp.float32)

    has_pos = position_ids is not None
    if not has_pos:
        # torch default: arange(max_position_embeddings).expand_as(input_ids)
        # (expand_as itself requires S == max_position_embeddings).
        assert S == P, "default position path requires seq_len == max_position_embeddings"
        # Tile-invariant (TT, H) slab: token t inside a tile has position t % S.
        pe_slab = jnp.tile(pos_table, (TB, 1))
        pos_inputs = (pe_slab,)
        pos_specs = [pl.BlockSpec((TT, H), lambda i, ids: (0, 0))]
    else:
        posid2d = position_ids.reshape(N, 1).astype(jnp.int32)
        pos_inputs = (posid2d, pos_table)
        pos_specs = [pl.BlockSpec((TT, 1), lambda i, ids: (i, 0)),
                     pl.BlockSpec((P, H), lambda i, ids: (0, 0))]

    grid_spec = pltpu.PrefetchScalarGridSpec(
        num_scalar_prefetch=1,                 # token ids -> SMEM, drive the HBM row gather
        grid=(num_tiles,),
        in_specs=[
            pl.BlockSpec((TT, 1), lambda i, ids: (i, 0)),      # segment ids (tiled)
            *pos_specs,                                        # position inputs
            pl.BlockSpec((E, H), lambda i, ids: (0, 0)),       # W2 (resident)
            pl.BlockSpec((3, H), lambda i, ids: (0, 0)),       # type table (resident)
            pl.BlockSpec((1, H), lambda i, ids: (0, 0)),       # LN gamma
            pl.BlockSpec((1, H), lambda i, ids: (0, 0)),       # LN beta
            pl.BlockSpec(memory_space=pl.ANY),                 # (V, 128) word table stays in HBM
        ],
        out_specs=pl.BlockSpec((TT, H), lambda i, ids: (i, 0)),
        scratch_shapes=[pltpu.VMEM((2, TT, E), jnp.float32),   # double-buffered gathered rows
                        pltpu.SemaphoreType.DMA((2,))],
    )

    out_flat = pl.pallas_call(
        functools.partial(embeddings_kernel, has_pos_ids=has_pos),
        out_shape=jax.ShapeDtypeStruct((N, H), jnp.float32),
        grid_spec=grid_spec,
        compiler_params=pltpu.CompilerParams(
            # "arbitrary": the manual cross-iteration gather prefetch carries DMA
            # state between grid steps, so this axis must not be megacore-sharded.
            # TODO(synk): for v7x 2-TC, split the batch one level above this call
            # (shard/vmap) or switch to per-core work splitting via pl.core_map.
            dimension_semantics=("arbitrary",),
            vmem_limit_bytes=VMEM_LIMIT_BYTES),
    )(ids_flat, seg2d, *pos_inputs, w2, type_table, gamma2d, beta2d, word_table)

    # TODO(synk): for H < 128 the (TT, H) output block lowers to masked stores;
    # pack 128/H token rows per lane-dense store row if that ever matters.
    return out_flat.reshape(B, S, H)


def reference_forward(input_ids, segment_ids, params, position_ids=None):
    B, S = input_ids.shape
    if position_ids is None:
        position_ids = jnp.broadcast_to(
            jnp.arange(S, dtype=jnp.int32)[None, :], (B, S))
    we = jnp.dot(jnp.take(params["word_table"].astype(jnp.float32), input_ids, axis=0),
                 params["w2"].astype(jnp.float32), precision=lax.Precision.HIGHEST)
    pe = jnp.take(params["pos_table"], position_ids, axis=0)
    te = jnp.take(params["type_table"], segment_ids, axis=0)
    x = we + pe + te
    mean = jnp.mean(x, axis=-1, keepdims=True)
    var = jnp.mean((x - mean) ** 2, axis=-1, keepdims=True)
    xn = (x - mean) / jnp.sqrt(var + LN_EPS)
    return xn * params["gamma"] + params["beta"]


if __name__ == "__main__":
    # Small config consistent with the module: vocab=512, hidden=128,
    # max_position_embeddings = seq_len = 16, batch = 8  ->  2 batch tiles
    # (exercises the cross-iteration gather prefetch).
    V, H, P = 512, 128, 16
    B, S = 8, P

    key = jax.random.PRNGKey(0)
    k_w, k_w2, k_p, k_t, k_g, k_b, k_ids, k_seg, k_pos = jax.random.split(key, 9)

    word_table = 0.02 * jax.random.normal(k_w, (V, WORD_DIM), dtype=jnp.float32)
    word_table = word_table.at[0].set(0.0)        # nn.Embedding padding_idx=0 -> zero row
    params = dict(
        word_table=word_table,
        w2=0.02 * jax.random.normal(k_w2, (WORD_DIM, H), dtype=jnp.float32),
        pos_table=0.02 * jax.random.normal(k_p, (P, H), dtype=jnp.float32),
        type_table=0.02 * jax.random.normal(k_t, (3, H), dtype=jnp.float32),
        gamma=1.0 + 0.1 * jax.random.normal(k_g, (H,), dtype=jnp.float32),
        beta=0.1 * jax.random.normal(k_b, (H,), dtype=jnp.float32),
    )

    input_ids = jax.random.randint(k_ids, (B, S), 0, V, dtype=jnp.int32)
    input_ids = input_ids.at[:, -1].set(0)        # exercise padding_idx rows
    segment_ids = jax.random.randint(k_seg, (B, S), 0, 3, dtype=jnp.int32)

    # Default (position_ids=None) path.
    out = jax.block_until_ready(embeddings_forward(input_ids, segment_ids, params))
    ref = reference_forward(input_ids, segment_ids, params)
    np.testing.assert_allclose(np.asarray(out), np.asarray(ref), atol=2e-4, rtol=2e-4)

    # Explicit position_ids path.
    pos_ids = jax.random.randint(k_pos, (B, S), 0, P, dtype=jnp.int32)
    out2 = jax.block_until_ready(
        embeddings_forward(input_ids, segment_ids, params, pos_ids))
    ref2 = reference_forward(input_ids, segment_ids, params, pos_ids)
    np.testing.assert_allclose(np.asarray(out2), np.asarray(ref2), atol=2e-4, rtol=2e-4)

    print("KERNEL_OK")
</pallas_src>

<mosaic_0001>
module attributes {stable_mosaic.version = 11 : i64} {
  func.func @embeddings_kernel(%arg0: i32, %arg1: memref<128xi32, #tpu.memory_space<smem>>, %arg2: memref<64x1xi32, #tpu.memory_space<vmem>>, %arg3: memref<64x128xf32, #tpu.memory_space<vmem>>, %arg4: memref<128x128xf32, #tpu.memory_space<vmem>>, %arg5: memref<3x128xf32, #tpu.memory_space<vmem>>, %arg6: memref<1x128xf32, #tpu.memory_space<vmem>>, %arg7: memref<1x128xf32, #tpu.memory_space<vmem>>, %arg8: memref<512x128xf32, #tpu.memory_space<any>>, %arg9: memref<64x128xf32, #tpu.memory_space<vmem>>, %arg10: memref<2x64x128xf32, #tpu.memory_space<vmem>>, %arg11: memref<2x!tpu.dma_semaphore, #tpu.memory_space<semaphore_mem>>) attributes {dimension_semantics = [#tpu.dimension_semantics<arbitrary>], iteration_bounds = array<i64: 2>, scalar_prefetch = 1 : i64, scratch_operands = 2 : i64, tpu.core_type = #tpu.core_type<tc>, window_params = [{transform_indices = @transform_0, window_bounds = array<i64: 64, 1>}, {pipeline_mode = #tpu.pipeline_mode<synchronous>, transform_indices = @transform_1, window_bounds = array<i64: 64, 128>}, {pipeline_mode = #tpu.pipeline_mode<synchronous>, transform_indices = @transform_2, window_bounds = array<i64: 128, 128>}, {pipeline_mode = #tpu.pipeline_mode<synchronous>, transform_indices = @transform_3, window_bounds = array<i64: 3, 128>}, {pipeline_mode = #tpu.pipeline_mode<synchronous>, transform_indices = @transform_4, window_bounds = array<i64: 1, 128>}, {pipeline_mode = #tpu.pipeline_mode<synchronous>, transform_indices = @transform_5, window_bounds = array<i64: 1, 128>}, {}, {transform_indices = @transform_7, window_bounds = array<i64: 64, 128>}]} {
    %c2_i32 = arith.constant 2 : i32
    %c0_i32 = arith.constant 0 : i32
    %0 = arith.cmpi eq, %c2_i32, %c0_i32 : i32
    %c1_i32 = arith.constant 1 : i32
    %1 = arith.select %0, %c1_i32, %c2_i32 : i32
    %2 = arith.remsi %arg0, %1 : i32
    %c0_i32_0 = arith.constant 0 : i32
    %3 = arith.cmpi ne, %2, %c0_i32_0 : i32
    %c0_i32_1 = arith.constant 0 : i32
    %4 = arith.cmpi slt, %2, %c0_i32_1 : i32
    %c0_i32_2 = arith.constant 0 : i32
    %5 = arith.cmpi slt, %1, %c0_i32_2 : i32
    %6 = arith.xori %4, %5 : i1
    %7 = arith.andi %6, %3 : i1
    %8 = arith.addi %2, %1 : i32
    %9 = arith.select %7, %8, %2 : i32
    %c0_i32_3 = arith.constant 0 : i32
    %10 = arith.cmpi eq, %arg0, %c0_i32_3 : i32
    %11 = arith.extui %10 : i1 to i32
    %c0_i32_4 = arith.constant 0 : i32
    %12 = arith.cmpi ne, %11, %c0_i32_4 : i32
    scf.if %12 {
      %c0_i32_33 = arith.constant 0 : i32
      %c64_i32_34 = arith.constant 64 : i32
      %76 = arith.addi %c0_i32_33, %c64_i32_34 : i32
      %c1_i32_35 = arith.constant 1 : i32
      scf.for %arg12 = %c0_i32_33 to %76 step %c1_i32_35  : i32 {
        %c0_i32_37 = arith.constant 0 : i32
        %77 = arith.addi %c0_i32_37, %arg12 : i32
        %78 = arith.index_cast %77 : i32 to index
        %79 = memref.load %arg1[%78] : memref<128xi32, #tpu.memory_space<smem>>
        %c0_i32_38 = arith.constant 0 : i32
        %c0_i32_39 = arith.constant 0 : i32
        %c0_i32_40 = arith.constant 0 : i32
        %80 = tpu.memref_slice %arg8[%79, %c0_i32_40] : memref<512x128xf32, #tpu.memory_space<any>> -> memref<1x128xf32, #tpu.memory_space<any>>
        %c0_i32_41 = arith.constant 0 : i32
        %81 = tpu.memref_slice %arg10[%c0_i32_38, %arg12, %c0_i32_41] : memref<2x64x128xf32, #tpu.memory_space<vmem>> -> memref<1x1x128xf32, #tpu.memory_space<vmem>>
        %82 = tpu.memref_squeeze %81 : memref<1x1x128xf32, #tpu.memory_space<vmem>> -> memref<1x128xf32, #tpu.memory_space<vmem>>
        %83 = tpu.memref_slice %arg11[%c0_i32_39] : memref<2x!tpu.dma_semaphore, #tpu.memory_space<semaphore_mem>> -> memref<1x!tpu.dma_semaphore, #tpu.memory_space<semaphore_mem>>
        %84 = tpu.memref_squeeze %83 : memref<1x!tpu.dma_semaphore, #tpu.memory_space<semaphore_mem>> -> memref<!tpu.dma_semaphore, #tpu.memory_space<semaphore_mem>>
        tpu.enqueue_dma source(%80 : memref<1x128xf32, #tpu.memory_space<any>>) target(%82 : memref<1x128xf32, #tpu.memory_space<vmem>>) target_semaphore(%84 : memref<!tpu.dma_semaphore, #tpu.memory_space<semaphore_mem>>)
      }
      %c64_i32_36 = arith.constant 64 : i32
    } else {
    }
    %c1_i32_5 = arith.constant 1 : i32
    %13 = arith.addi %arg0, %c1_i32_5 : i32
    %c2_i32_6 = arith.constant 2 : i32
    %14 = arith.cmpi slt, %13, %c2_i32_6 : i32
    %15 = arith.extui %14 : i1 to i32
    %c0_i32_7 = arith.constant 0 : i32
    %16 = arith.cmpi ne, %15, %c0_i32_7 : i32
    scf.if %16 {
      %c1_i32_33 = arith.constant 1 : i32
      %76 = arith.addi %arg0, %c1_i32_33 : i32
      %c1_i32_34 = arith.constant 1 : i32
      %77 = arith.subi %c1_i32_34, %9 : i32
      %c64_i32_35 = arith.constant 64 : i32
      %78 = arith.muli %76, %c64_i32_35 : i32
      %c0_i32_36 = arith.constant 0 : i32
      %c64_i32_37 = arith.constant 64 : i32
      %79 = arith.addi %c0_i32_36, %c64_i32_37 : i32
      %c1_i32_38 = arith.constant 1 : i32
      scf.for %arg12 = %c0_i32_36 to %79 step %c1_i32_38  : i32 {
        %80 = arith.addi %78, %arg12 : i32
        %81 = arith.index_cast %80 : i32 to index
        %82 = memref.load %arg1[%81] : memref<128xi32, #tpu.memory_space<smem>>
        %c0_i32_40 = arith.constant 0 : i32
        %83 = tpu.memref_slice %arg8[%82, %c0_i32_40] : memref<512x128xf32, #tpu.memory_space<any>> -> memref<1x128xf32, #tpu.memory_space<any>>
        %c0_i32_41 = arith.constant 0 : i32
        %84 = tpu.memref_slice %arg10[%77, %arg12, %c0_i32_41] : memref<2x64x128xf32, #tpu.memory_space<vmem>> -> memref<1x1x128xf32, #tpu.memory_space<vmem>>
        %85 = tpu.memref_squeeze %84 : memref<1x1x128xf32, #tpu.memory_space<vmem>> -> memref<1x128xf32, #tpu.memory_space<vmem>>
        %86 = tpu.memref_slice %arg11[%77] : memref<2x!tpu.dma_semaphore, #tpu.memory_space<semaphore_mem>> -> memref<1x!tpu.dma_semaphore, #tpu.memory_space<semaphore_mem>>
        %87 = tpu.memref_squeeze %86 : memref<1x!tpu.dma_semaphore, #tpu.memory_space<semaphore_mem>> -> memref<!tpu.dma_semaphore, #tpu.memory_space<semaphore_mem>>
        tpu.enqueue_dma source(%83 : memref<1x128xf32, #tpu.memory_space<any>>) target(%85 : memref<1x128xf32, #tpu.memory_space<vmem>>) target_semaphore(%87 : memref<!tpu.dma_semaphore, #tpu.memory_space<semaphore_mem>>)
      }
      %c64_i32_39 = arith.constant 64 : i32
    } else {
    }
    %c0_i32_8 = arith.constant 0 : i32
    %c64_i32 = arith.constant 64 : i32
    %17 = arith.addi %c0_i32_8, %c64_i32 : i32
    %c1_i32_9 = arith.constant 1 : i32
    scf.for %arg12 = %c0_i32_8 to %17 step %c1_i32_9  : i32 {
      %c0_i32_33 = arith.constant 0 : i32
      %c0_i32_34 = arith.constant 0 : i32
      %76 = tpu.memref_slice %arg8[%c0_i32_33, %c0_i32_34] : memref<512x128xf32, #tpu.memory_space<any>> -> memref<1x128xf32, #tpu.memory_space<any>>
      %c0_i32_35 = arith.constant 0 : i32
      %77 = tpu.memref_slice %arg10[%9, %arg12, %c0_i32_35] : memref<2x64x128xf32, #tpu.memory_space<vmem>> -> memref<1x1x128xf32, #tpu.memory_space<vmem>>
      %78 = tpu.memref_squeeze %77 : memref<1x1x128xf32, #tpu.memory_space<vmem>> -> memref<1x128xf32, #tpu.memory_space<vmem>>
      %79 = tpu.memref_slice %arg11[%9] : memref<2x!tpu.dma_semaphore, #tpu.memory_space<semaphore_mem>> -> memref<1x!tpu.dma_semaphore, #tpu.memory_space<semaphore_mem>>
      %80 = tpu.memref_squeeze %79 : memref<1x!tpu.dma_semaphore, #tpu.memory_space<semaphore_mem>> -> memref<!tpu.dma_semaphore, #tpu.memory_space<semaphore_mem>>
      tpu.wait_dma2 semaphore(%80 : memref<!tpu.dma_semaphore, #tpu.memory_space<semaphore_mem>>) src(%76 : memref<1x128xf32, #tpu.memory_space<any>>) dst(%78 : memref<1x128xf32, #tpu.memory_space<vmem>>)
    }
    %c64_i32_10 = arith.constant 64 : i32
    %18 = arith.index_cast %9 : i32 to index
    %c0 = arith.constant 0 : index
    %c0_11 = arith.constant 0 : index
    %19 = vector.load %arg10[%18, %c0, %c0_11] : memref<2x64x128xf32, #tpu.memory_space<vmem>>, vector<1x64x128xf32>
    %20 = vector.shape_cast %19 : vector<1x64x128xf32> to vector<64x128xf32>
    %c0_12 = arith.constant 0 : index
    %c0_13 = arith.constant 0 : index
    %21 = vector.load %arg4[%c0_12, %c0_13] : memref<128x128xf32, #tpu.memory_space<vmem>>, vector<128x128xf32>
    %cst = arith.constant dense<0.000000e+00> : vector<64x128xf32>
    %22 = tpu.matmul %20, %21, %cst {dimension_numbers = #tpu.dot_dimension_numbers<[1], [0], [0], [1], [0, 0, 1, 1], [], []>} : vector<64x128xf32>, vector<128x128xf32>, vector<64x128xf32> -> vector<64x128xf32>
    %c0_14 = arith.constant 0 : index
    %c0_15 = arith.constant 0 : index
    %23 = vector.load %arg3[%c0_14, %c0_15] : memref<64x128xf32, #tpu.memory_space<vmem>>, vector<64x128xf32>
    %c0_16 = arith.constant 0 : index
    %c0_17 = arith.constant 0 : index
    %24 = vector.load %arg2[%c0_16, %c0_17] : memref<64x1xi32, #tpu.memory_space<vmem>>, vector<64x1xi32>
    %c0_18 = arith.constant 0 : index
    %c0_19 = arith.constant 0 : index
    %25 = vector.load %arg5[%c0_18, %c0_19] : memref<3x128xf32, #tpu.memory_space<vmem>>, vector<3x128xf32>
    %c0_i32_20 = arith.constant 0 : i32
    %26 = vector.broadcast %c0_i32_20 : i32 to vector<64x1xi32>
    %27 = arith.cmpi eq, %24, %26 : vector<64x1xi32>
    %28 = vector.extract_strided_slice %25 {offsets = [0, 0], sizes = [1, 128], strides = [1, 1]} : vector<3x128xf32> to vector<1x128xf32>
    %29 = vector.shape_cast %28 : vector<1x128xf32> to vector<128xf32>
    %30 = vector.shape_cast %29 : vector<128xf32> to vector<1x128xf32>
    %c1_i32_21 = arith.constant 1 : i32
    %31 = vector.broadcast %c1_i32_21 : i32 to vector<64x1xi32>
    %32 = arith.cmpi eq, %24, %31 : vector<64x1xi32>
    %33 = vector.extract_strided_slice %25 {offsets = [1, 0], sizes = [1, 128], strides = [1, 1]} : vector<3x128xf32> to vector<1x128xf32>
    %34 = vector.shape_cast %33 : vector<1x128xf32> to vector<128xf32>
    %35 = vector.shape_cast %34 : vector<128xf32> to vector<1x128xf32>
    %36 = vector.extract_strided_slice %25 {offsets = [2, 0], sizes = [1, 128], strides = [1, 1]} : vector<3x128xf32> to vector<1x128xf32>
    %37 = vector.shape_cast %36 : vector<1x128xf32> to vector<128xf32>
    %38 = vector.shape_cast %37 : vector<128xf32> to vector<1x128xf32>
    %39 = vector.shape_cast %32 : vector<64x1xi1> to vector<64x1xi1>
    %40 = vector.broadcast %39 : vector<64x1xi1> to vector<64x128xi1>
    %41 = vector.shape_cast %35 : vector<1x128xf32> to vector<1x128xf32>
    %42 = vector.broadcast %41 : vector<1x128xf32> to vector<64x128xf32>
    %43 = vector.shape_cast %38 : vector<1x128xf32> to vector<1x128xf32>
    %44 = vector.broadcast %43 : vector<1x128xf32> to vector<64x128xf32>
    %45 = arith.select %40, %42, %44 : vector<64x128xi1>, vector<64x128xf32>
    %46 = vector.shape_cast %27 : vector<64x1xi1> to vector<64x1xi1>
    %47 = vector.broadcast %46 : vector<64x1xi1> to vector<64x128xi1>
    %48 = vector.shape_cast %30 : vector<1x128xf32> to vector<1x128xf32>
    %49 = vector.broadcast %48 : vector<1x128xf32> to vector<64x128xf32>
    %50 = arith.select %47, %49, %45 : vector<64x128xi1>, vector<64x128xf32>
    %51 = arith.addf %22, %23 : vector<64x128xf32>
    %52 = arith.addf %51, %50 : vector<64x128xf32>
    %cst_22 = arith.constant dense<0.000000e+00> : vector<64xf32>
    %53 = vector.multi_reduction <add>, %52, %cst_22 [1] : vector<64x128xf32> to vector<64xf32>
    %54 = vector.shape_cast %53 : vector<64xf32> to vector<64x1xf32>
    %cst_23 = arith.constant 1.280000e+02 : f32
    %55 = vector.broadcast %cst_23 : f32 to vector<64x1xf32>
    %56 = arith.divf %54, %55 : vector<64x1xf32>
    %57 = vector.broadcast %56 : vector<64x1xf32> to vector<64x128xf32>
    %58 = arith.subf %52, %57 : vector<64x128xf32>
    %59 = arith.mulf %58, %58 : vector<64x128xf32>
    %cst_24 = arith.constant dense<0.000000e+00> : vector<64xf32>
    %60 = vector.multi_reduction <add>, %59, %cst_24 [1] : vector<64x128xf32> to vector<64xf32>
    %61 = vector.shape_cast %60 : vector<64xf32> to vector<64x1xf32>
    %cst_25 = arith.constant 1.280000e+02 : f32
    %62 = vector.broadcast %cst_25 : f32 to vector<64x1xf32>
    %63 = arith.divf %61, %62 : vector<64x1xf32>
    %cst_26 = arith.constant 9.99999996E-13 : f32
    %64 = vector.broadcast %cst_26 : f32 to vector<64x1xf32>
    %65 = arith.addf %63, %64 : vector<64x1xf32>
    %66 = math.rsqrt %65 : vector<64x1xf32>
    %c0_27 = arith.constant 0 : index
    %c0_28 = arith.constant 0 : index
    %67 = vector.load %arg6[%c0_27, %c0_28] : memref<1x128xf32, #tpu.memory_space<vmem>>, vector<1x128xf32>
    %68 = vector.broadcast %66 : vector<64x1xf32> to vector<64x128xf32>
    %69 = vector.broadcast %67 : vector<1x128xf32> to vector<64x128xf32>
    %70 = arith.mulf %68, %69 : vector<64x128xf32>
    %71 = arith.mulf %58, %70 : vector<64x128xf32>
    %c0_29 = arith.constant 0 : index
    %c0_30 = arith.constant 0 : index
    %72 = vector.load %arg7[%c0_29, %c0_30] : memref<1x128xf32, #tpu.memory_space<vmem>>, vector<1x128xf32>
    %73 = vector.broadcast %72 : vector<1x128xf32> to vector<64x128xf32>
    %74 = arith.addf %71, %73 : vector<64x128xf32>
    %c0_31 = arith.constant 0 : index
    %c0_32 = arith.constant 0 : index
    %75 = vector.load %arg9[%c0_31, %c0_32] : memref<64x128xf32, #tpu.memory_space<vmem>>, vector<64x128xf32>
    tpu.vector_store %arg9[%c0_31, %c0_32], %74 {strides = array<i32>} : memref<64x128xf32, #tpu.memory_space<vmem>>, vector<64x128xf32>,
    return
  }
  func.func @transform_0(%arg0: i32, %arg1: memref<128xi32, #tpu.memory_space<smem>>) -> (i32, i32) {
    %c0_i32 = arith.constant 0 : i32
    %c0_i32_0 = arith.constant 0 : i32
    return %arg0, %c0_i32 : i32, i32
  }
  func.func @transform_1(%arg0: i32, %arg1: memref<128xi32, #tpu.memory_space<smem>>) -> (i32, i32) {
    %c0_i32 = arith.constant 0 : i32
    %c0_i32_0 = arith.constant 0 : i32
    %c0_i32_1 = arith.constant 0 : i32
    return %c0_i32, %c0_i32_0 : i32, i32
  }
  func.func @transform_2(%arg0: i32, %arg1: memref<128xi32, #tpu.memory_space<smem>>) -> (i32, i32) {
    %c0_i32 = arith.constant 0 : i32
    %c0_i32_0 = arith.constant 0 : i32
    %c0_i32_1 = arith.constant 0 : i32
    return %c0_i32, %c0_i32_0 : i32, i32
  }
  func.func @transform_3(%arg0: i32, %arg1: memref<128xi32, #tpu.memory_space<smem>>) -> (i32, i32) {
    %c0_i32 = arith.constant 0 : i32
    %c0_i32_0 = arith.constant 0 : i32
    %c0_i32_1 = arith.constant 0 : i32
    return %c0_i32, %c0_i32_0 : i32, i32
  }
  func.func @transform_4(%arg0: i32, %arg1: memref<128xi32, #tpu.memory_space<smem>>) -> (i32, i32) {
    %c0_i32 = arith.constant 0 : i32
    %c0_i32_0 = arith.constant 0 : i32
    %c0_i32_1 = arith.constant 0 : i32
    return %c0_i32, %c0_i32_0 : i32, i32
  }
  func.func @transform_5(%arg0: i32, %arg1: memref<128xi32, #tpu.memory_space<smem>>) -> (i32, i32) {
    %c0_i32 = arith.constant 0 : i32
    %c0_i32_0 = arith.constant 0 : i32
    %c0_i32_1 = arith.constant 0 : i32
    return %c0_i32, %c0_i32_0 : i32, i32
  }
  func.func @transform_7(%arg0: i32, %arg1: memref<128xi32, #tpu.memory_space<smem>>) -> (i32, i32) {
    %c0_i32 = arith.constant 0 : i32
    %c0_i32_0 = arith.constant 0 : i32
    return %arg0, %c0_i32 : i32, i32
  }
}

</mosaic_0001>

<bundles_post_ra>
// kernel: tpu_custom_call.1
= control target key start
LH: loop header
LB: loop body
LE: loop exit
PB: predicated region body
PF: predicated region fallthrough
CT: control target
= control target key end

     0   :  { %s1795_s0 = inlined_call_operand.vmem [shape: s32[128], index: 0, kind: input, shape index: {}]   ;;  %s1796_s1 = inlined_call_operand.vmem [shape: s32[128,1], index: 1, kind: input, shape index: {}]   ;;  %s1797_s2 = inlined_call_operand.hbm [shape: f32[64,128], index: 2, kind: input, shape index: {}]   ;;  %s1798_s3 = inlined_call_operand.vmem [shape: f32[128,128], index: 3, kind: input, shape index: {}]   ;;  %s1799_s4 = inlined_call_operand.vmem [shape: f32[3,128], index: 4, kind: input, shape index: {}]   ;;  %s1800_s5 = inlined_call_operand.vmem [shape: f32[1,128], index: 5, kind: input, shape index: {}]   ;;  %s1801_s6 = inlined_call_operand.vmem [shape: f32[1,128], index: 6, kind: input, shape index: {}]   ;;  %s1802_s7 = inlined_call_operand.hbm [shape: f32[512,128], index: 7, kind: input, shape index: {}]   ;;  %s1803_s8 = inlined_call_operand.hbm [shape: f32[128,128], index: 8, kind: output, shape index: {}]  }
   0x1   :  { %1814 = sst [smem:[#allocation27_spill]] %s1796_s1  ;;  %s13_s29 = sshll.u32 %s1795_s0, 4  ;;  %s14_s29 = int_to_ptr.vmem [resolvable:$true] %s13_s29 }
   0x2   :  { %1815 = sst [smem:[#allocation28_spill]] %s1797_s2  ;;  %s1135_s30 = scalar_lea.vmem %s14_s29, 16 }
   0x3   :  { %p1136_p0 = scmp.ne.s32.totalorder %s14_s29, %s1135_s30  ;;  %p1140_p1 = scmp.lt.s32.totalorder %s14_s29, %s14_s29 }
   0x4   :  { %p1141_p2 = scmp.lt.s32.totalorder %s1135_s30, %s1135_s30 }
   0x6   :  { %p1142_p3 = por %p1141_p2, %p1140_p1 }
   0x8   :  { %p1143_p4 = pnand %p1142_p3, %p1136_p0 }
   0xa   :  { %1146 = shalt.err (!%p1143_p4)  }
   0xb   :  { %s1319_s9 = smov [#allocation5]  }
   0xc   :  { %16 = dma.vmem_to_smem %s14_s29, 16, %s1319_s9, [#allocation4] }
   0xd   :  { %1279 = dma.done.wait [#allocation4], 16 }
   0xe   :  { %1280 = vsyncadd [#allocation4], 4294967280 }
   0xf   :  { %18 = sfence }
  0x10   :  { %19 = vsyncpa [#allocation7], 0 }
  0x11   :  { %20 = vsyncpa [#allocation8], 0 }
  0x12   :  { %22 = vsyncpa [#allocation8 + $0x1], 0  ;;  %s1377_s10 = smov 0   ;;  %s1379_s11 = smov 0  }
  0x13   :  { %s1381_s0 = smov 0   ;;  %s1383_s12 = smov 0  }
  0x14 LB: > { %1816 = sst [smem:[#allocation20_spill]] %s1293_s10  ;;  %s1398_s13 = sadd.s32 4294967295, %s1305_s12   ;;  %s1305_s12 = sphi %s1383_s12, %s1840_s12   ;;  %s1301_s0 = sphi %s1381_s0, %s1842_s0   ;;  %s1297_s11 = sphi %s1379_s11, %s1844_s11   ;;  %s1293_s10 = sphi %s1377_s10, %s1843_s10  }
  0x15   : > { %1817 = sst [smem:[#allocation21_spill]] %s1301_s0  ;;  %s890_s14 = sadd.s32 4294967294, %s1305_s12  }
  0x16   : > { %1818 = sst [smem:[#allocation22_spill]] %s1305_s12  ;;  %s1402_s15 = sadd.s32 1, %s1305_s12  }
  0x17   : > { %1819 = sst [smem:[#allocation23_spill]] %s1402_s15  ;;  %s166_s16 = sadd.s32 1, %s1301_s0 }
  0x18   : > { %s163_s17 = ssub.s32 %s1305_s12, %s1402_s15  ;;  %p176_p5 = scmp.ne.s32.totalorder %s1301_s0, %s1297_s11 }
  0x19   : > { %p164_p6 = scmp.eq.s32.totalorder %s163_s17, 0  ;;  %p177_p7 = scmp.eq.s32.totalorder %s1398_s13, 1 }
  0x1a   : > { %p182_p8 = scmp.ne.s32.totalorder %s1297_s11, %s1293_s10  ;;  %p183_p9 = scmp.eq.s32.totalorder %s890_s14, 1 }
  0x1b   : > { %s1413_s18 = scalar_select %p164_p6, %s1301_s0, %s166_s16  }
  0x1c   : > { %p1415_p10 = por %p177_p7, %p176_p5  ;;  %p1419_p11 = por %p183_p9, %p182_p8 }
  0x1d   : > { %1820 = sst [smem:[#allocation24_spill]] %s1413_s18  ;;  %p891_p12 = scmp.ge.s32.totalorder %s1305_s12, 1 }
  0x1e   : > { %s1821_s19 = scalar_select %p1415_p10, 1, 0 }
  0x1f   : > { %s1822_s20 = scalar_select %p1419_p11, 1, 0 }
  0x20   : > { %p190_p13 = scmp.lt.s32.totalorder %s1305_s12, 3  ;;  %p1804_p1 = scmp.eq.s32.totalorder %s1398_s13, 0 }
  0x21   : > { %1823 = sst [smem:[#allocation25_spill]] %s1822_s20  ;;  %s1320_s22 = smov [#allocation6]  }
  0x22   : > { %p1427_p2 = pnand %p891_p12, %p190_p13  ;;  %s202_s23 = sshll.u32 %s1320_s22, 4  ;;  %s203_s23 = int_to_ptr.vmem [resolvable:$true] %s202_s23 }
  0x23   : > { %s1826_s2 = sld [smem:[#allocation28_spill]] }
  0x24   : > { %s1824_s21 = scalar_select %p1427_p2, 1, 0 }
  0x25   : > { %p1043_p3 = pneg %p1427_p2 }
  0x27   : > { %p1435_p4 = pnand %p1804_p1, %p1043_p3 }
  0x29   : > { %s1147_s27 = scalar_lea.hbm %s1826_s2, 1024  ;;  %p1149_p6 = pneg %p1435_p4 }
  0x2a   : > { %p1148_p5 = scmp.ne.s32.totalorder %s1826_s2, %s1147_s27  ;;  %p1154_p9 = scmp.lt.u32.totalorder %s1147_s27, %s1826_s2 }
  0x2c   : > { %p1150_p7 = pnand %p1149_p6, %p1148_p5 }
  0x2e   : > { %p1151_p8 = pneg %p1150_p7 }
  0x30   : > { %p1156_p12 = pnand %p1154_p9, %p1151_p8 }
  0x32   : > { %1159 = shalt.err (!%p1156_p12)
}
  0x33   : > { %s1160_s14 = scalar_lea.vmem %s203_s23, 1024  ;;  %p1168_p1 = scmp.lt.s32.totalorder %s203_s23, %s203_s23 }
  0x34   : > { %p1161_p13 = scmp.ne.s32.totalorder %s203_s23, %s1160_s14  ;;  %p1169_p11 = scmp.lt.s32.totalorder %s1160_s14, %s1160_s14 }
  0x36   : > { %p1163_p3 = pnand %p1161_p13, %p1149_p6  ;;  %p1170_p10 = por %p1169_p11, %p1168_p1 }
  0x38   : > { %p1164_p0 = pneg %p1163_p3 }
  0x3a   : > { %p1171_p2 = pnand %p1170_p10, %p1164_p0 }
  0x3c   : > { %1174 = shalt.err (!%p1171_p2)
}
  0x3d   : > { %s1321_s16 = smov 128   ;;  %s1322_s17 = smov 8  }
  0x3e   : > { %1046 = dma.hbm_to_vmem [thread:$0]  (!%p1435_p4), %s1826_s2, 1024, %s203_s23, [#allocation7], %s1321_s16, %s1321_s16, %s1322_s17  }
  0x3f   : > { %p1827_p5 = scmp.ne.s32.totalorder %s1824_s21, 0 }
  0x41   : > { %239 = sbr.rel (%p1827_p5) target bundleno = 785 (0x311), region = 44 }
  0x48   : > { %p1828_p7 = scmp.eq.s32.totalorder %s1398_s13, 0 }
  0x4a   : > { %1282 = dma.done.wait (%p1828_p7), [#allocation7], 1024   ;;  %p1829_p6 = pmov %p1828_p7 }
  0x4b   : > { %s1807_s24 = sand.u32 1, %s1297_s11   ;;  %s897_s26 = sshll.u32 %s1398_s13, 3 }
  0x4c   : > { %1284 = vsyncadd (%p1829_p6), [#allocation7], 4294966272  ;;  %s896_s27 = sshll.u32 %s1807_s24, 6  ;;  %p270_p10 = scmp.lt.s32.totalorder %s897_s26, 15 }
  0x4d   : > { %p276_p11 = scmp.lt.s32.totalorder %s1398_s13, 0  ;;  %s277_s21 = ssub.s32 0, %s1398_s13 }
  0x4e   : > { %s1846_s26 = smov (!%p270_p10, %s897_s26), 15  ;;  %s899_s28 = smin.u32 %s1398_s13, %s277_s21 }
  0x4f   : > { %s898_s23 = sshll.u32 %s1846_s26, 3  ;;  %s1830_s1 = sld [smem:[#allocation27_spill]] }
  0x50   : > { %s279_s14 = sand.u32 1, %s899_s28   ;;  %s1475_s22 = scalar_lea.vmem [#allocation9], %s896_s27 }
  0x51   : > { %s280_s16 = ssub.s32 0, %s279_s14  ;;  %p1831_p1 = scmp.ne.s32.totalorder %s1398_s13, 0 }
  0x52   : > { %s1848_s16 = smov (!%p276_p11, %s280_s16), %s279_s14  ;;  %s1479_s25 = smov (!%p1831_p1), 0  }
  0x53   : > { %p901_p0 = scmp.lt.s32.totalorder %s1848_s16, 0  ;;  %s286_s17 = sadd.s32 2, %s1848_s16 }
  0x54   : > { %291 = sbr.rel (%p1831_p1) target bundleno = 130 (0x82), region = 52 }
  0x55   : > { %s1471_s9 = scalar_lea.vmem %s1830_s1, %s898_s23  ;;  %s1850_s17 = smov (!%p901_p0, %s286_s17), %s1848_s16 }
  0x5b LB: >> { %s298_s26 = sld [smem:[#allocation5 + %s1309_s25]]  ;;  %s301_s21 = scalar_lea.vmem [#allocation2], %s1309_s25  ;;  %s1309_s25 = sphi %s1479_s25, %s297_s25  }
  0x5c   : >> { %s309_s23 = sshll.u32 %s301_s21, 4  ;;  %s1177_s1 = scalar_lea.hbm %s1802_s7, 8192  ;;  %s310_s23 = int_to_ptr.vmem [resolvable:$true] %s309_s23 }
  0x61   : >> { %s903_s28 = sshll.u32 %s298_s26, 4 }
  0x62   : >> { %s300_s30 = scalar_lea.hbm %s1802_s7, %s903_s28 }
  0x63   : >> { %s1175_s14 = scalar_lea.hbm %s300_s30, 16  ;;  %p1178_p4 = scmp.lt.u32.totalorder %s300_s30, %s1802_s7 }
  0x64   : >> { %p1176_p2 = scmp.ne.s32.totalorder %s300_s30, %s1175_s14  ;;  %p1179_p8 = scmp.lt.u32.totalorder %s1177_s1, %s1175_s14 }
  0x65   : >> { %p1181_p12 = scmp.lt.u32.totalorder %s1175_s14, %s300_s30 }
  0x66   : >> { %p1180_p9 = por %p1179_p8, %p1178_p4 }
  0x68   : >> { %p1182_p13 = por %p1181_p12, %p1180_p9 }
  0x6a   : >> { %p1183_p3 = pnand %p1182_p13, %p1176_p2 }
  0x6c   : >> { %1186 = shalt.err (!%p1183_p3)  }
  0x6d   : >> { %s1187_s26 = scalar_lea.vmem %s310_s23, 16  ;;  %s1323_s21 = smov [#allocation2]  }
  0x6e   : >> { %p1188_p5 = scmp.ne.s32.totalorder %s310_s23, %s1187_s26  ;;  %s1189_s28 = sshll.u32 %s1323_s21, 4  ;;  %s1190_s28 = int_to_ptr.vmem [resolvable:$false] %s1189_s28 }
  0x6f   : >> { %s1191_s29 = scalar_lea.vmem %s1190_s28, 2048  ;;  %p1192_p7 = scmp.lt.s32.totalorder %s310_s23, %s1190_s28 }
  0x70   : >> { %p1193_p6 = scmp.lt.s32.totalorder %s1191_s29, %s1187_s26 }
  0x72   : >> { %p1194_p10 = por %p1193_p6, %p1192_p7 }
  0x74   : >> { %p1195_p11 = pnand %p1194_p10, %p1188_p5 }
  0x76   : >> { %1198 = shalt.err (!%p1195_p11)  }
  0x77   : >> { %312 = dma.hbm_to_vmem [thread:$0]  %s300_s30, 16, %s310_s23, [#allocation3] }
  0x78   : >> { %s297_s25 = sadd.s32 1, %s1309_s25  }
  0x79   : >> { %p294_p0 = scmp.ge.s32.totalorder %s297_s25, 64  }
  0x7b   : > { %296 = sbr.rel (!%p294_p0) target bundleno = 91 (0x5b), region = 129 }
  0x82 PF: > { %s313_s1 = sadd.s32 1, %s1398_s13 }
  0x83   : > { %p904_p1 = scmp.ge.s32.totalorder %s313_s1, 2 }
  0x84   : > { %s318_s2 = ssub.s32 (!%p904_p1), 1, %s1850_s17  ;;  %s918_s18 = sshll.u32 (!%p904_p1), %s1398_s13, 6 }
  0x85   : > { %317 = sbr.rel (%p904_p1) target bundleno = 186 (0xba), region = 67  ;;  %s1501_s24 = sadd.s32 (!%p904_p1), 64, %s918_s18 }
  0x86   : > { %1832 = sst [smem:[#allocation26_spill]] (!%p904_p1), %s1501_s24  ;;  %s1503_s27 = smov (!%p904_p1), 0  }
  0x8c LB: >> { %s1833_s24 = sld [smem:[#allocation26_spill]]  ;;  %s907_s25 = sshll.u32 %s318_s2, 6  ;;  %s1313_s27 = sphi %s1503_s27, %s325_s27  }
  0x8d   : >> { %s331_s30 = sadd.s32 %s1313_s27, %s907_s25  ;;  %s333_s18 = scalar_lea.sflag [#allocation3], %s318_s2 }
  0x8e   : >> { %s332_s16 = scalar_lea.vmem [#allocation2], %s331_s30  ;;  %s1201_s10 = scalar_lea.hbm %s1802_s7, 8192 }
  0x8f   : >> { %s341_s26 = sshll.u32 %s332_s16, 4  ;;  %s342_s26 = int_to_ptr.vmem [resolvable:$true] %s341_s26 }
  0x92   : >> { %s326_s23 = sadd.s32 %s1313_s27, %s1833_s24 }
  0x93   : >> { %s327_s14 = sld [smem:[#allocation5 + %s326_s23]] }
  0x99   : >> { %s906_s21 = sshll.u32 %s327_s14, 4 }
  0x9a   : >> { %s329_s1 = scalar_lea.hbm %s1802_s7, %s906_s21 }
  0x9b   : >> { %s1199_s0 = scalar_lea.hbm %s329_s1, 16  ;;  %p1202_p4 = scmp.lt.u32.totalorder %s329_s1, %s1802_s7 }
  0x9c   : >> { %p1200_p2 = scmp.ne.s32.totalorder %s329_s1, %s1199_s0  ;;  %p1203_p8 = scmp.lt.u32.totalorder %s1201_s10, %s1199_s0 }
  0x9d   : >> { %p1205_p12 = scmp.lt.u32.totalorder %s1199_s0, %s329_s1 }
  0x9e   : >> { %p1204_p9 = por %p1203_p8, %p1202_p4 }
  0xa0   : >> { %p1206_p13 = por %p1205_p12, %p1204_p9 }
  0xa2   : >> { %p1207_p3 = pnand %p1206_p13, %p1200_p2 }
  0xa4   : >> { %1210 = shalt.err (!%p1207_p3)  }
  0xa5   : >> { %s1211_s25 = scalar_lea.vmem %s342_s26, 16  ;;  %s1324_s23 = smov [#allocation2]  }
  0xa6   : >> { %p1212_p5 = scmp.ne.s32.totalorder %s342_s26, %s1211_s25  ;;  %s1213_s30 = sshll.u32 %s1324_s23, 4  ;;  %s1214_s30 = int_to_ptr.vmem [resolvable:$false] %s1213_s30 }
  0xa7   : >> { %s1215_s14 = scalar_lea.vmem %s1214_s30, 2048  ;;  %p1216_p7 = scmp.lt.s32.totalorder %s342_s26, %s1214_s30 }
  0xa8   : >> { %p1217_p6 = scmp.lt.s32.totalorder %s1215_s14, %s1211_s25 }
  0xaa   : >> { %p1218_p10 = por %p1217_p6, %p1216_p7 }
  0xac   : >> { %p1219_p11 = pnand %p1218_p10, %p1212_p5 }
  0xae   : >> { %1222 = shalt.err (!%p1219_p11)  }
  0xaf   : >> { %344 = dma.hbm_to_vmem [thread:$0]  %s329_s1, 16, %s342_s26, %s333_s18 }
  0xb0   : >> { %s325_s27 = sadd.s32 1, %s1313_s27  }
  0xb1   : >> { %p322_p0 = scmp.ge.s32.totalorder %s325_s27, 64  }
  0xb3   : > { %324 = sbr.rel (!%p322_p0) target bundleno = 140 (0x8c), region = 140 }
  0xba PF: > { %s1315_s10 = smov 0  }
  0xbb LB: >> { %s351_s0 = scalar_lea.sflag [#allocation3], %s1850_s17  ;;  %s1317_s10 = sphi %s1315_s10, %s350_s10  }
  0xbc   : >> { %1285 = dma.done.wait %s351_s0, 16 }
  0xbd   : >> { %1286 = vsyncadd %s351_s0, 4294967280  ;;  %s350_s10 = sadd.s32 1, %s1317_s10  }
  0xbe   : >> { %p347_p1 = scmp.ge.s32.totalorder %s350_s10, 64  }
  0xbf   : > { %v365_v0 = vld [vmem:[%s1798_s3] sm:$0xff] (%p347_p1)  ;;  %v366_v1 = vld [vmem:[%s1798_s3 + $0x8] sm:$0xff] (%p347_p1)  ;;  %v367_v2 = vld [vmem:[%s1798_s3 + $0x10] sm:$0xff] (%p347_p1)  ;;  %s908_s16 = sshll.u32 (%p347_p1), %s1850_s17, 6  ;;  %v1325_v5 = vmov (%p347_p1), 0   ;;  %s920_s0 = sshll.u32 (%p347_p1), %s1398_s13, 10 }
  0xc0   : > { %349 = sbr.rel (!%p347_p1) target bundleno = 187 (0xbb), region = 151  ;;  %v989_v3 = vpack.c.bf16 (%p347_p1), %v366_v1, %v365_v0  ;;  %v368_v4 = vld [vmem:[%s1798_s3 + $0x18] sm:$0xff] (%p347_p1)  ;;  %1118 = vset.pattern.permute.xlu1 (%p347_p1), %v1325_v5  ;;  %1117 = vset.pattern.permute.xlu0 (%p347_p1), %v1325_v5  ;;  %v369_v7 = vld [vmem:[%s1798_s3 + $0x20] sm:$0xff] (%p347_p1)  ;;  %v370_v8 = vld [vmem:[%s1798_s3 + $0x28] sm:$0xff] (%p347_p1)  ;;  %s1549_s17 = scalar_lea.vmem (%p347_p1), [#allocation2], %s908_s16  ;;  %v454_v1 = vlaneseq (%p347_p1) }
  0xc1   : > { %v993_v6 = vpack.c.bf16 (%p347_p1), %v368_v4, %v367_v2  ;;  %v997_v9 = vpack.c.bf16 (%p347_p1), %v370_v8, %v369_v7  ;;  %v357_v10 = vld [vmem:[%s1549_s17] sm:$0xff] (%p347_p1)  ;;  %v371_v12 = vld [vmem:[%s1798_s3 + $0x30] sm:$0xff] (%p347_p1)  ;;  %v372_v13 = vld [vmem:[%s1798_s3 + $0x38] sm:$0xff] (%p347_p1)  ;;  %s776_s12 = sshll.u32 (%p347_p1), %s1475_s22, 4  ;;  %s1746_s24 = scalar_lea.hbm (%p347_p1), %s1803_s8, %s920_s0  ;;  %s1748_s12 = int_to_ptr.vmem [resolvable:$true] %s776_s12 }
  0xc2   : > { %990 = vmatprep.subr.bf16.mxu0 (%p347_p1), %v989_v3  ;;  %1021 = vmatprep.subr.bf16.mxu1 (%p347_p1), %v989_v3  ;;  %v361_v11 = vld [vmem:[%s1549_s17 + $0x20] sm:$0xff] (%p347_p1)  ;;  %v1560_v14 = vld [vmem:[%s1471_s9 + $0x10] sm:$0xff] (%p347_p1)  ;;  %v1563_v15 = vld [vmem:[%s1471_s9 + $0x18] sm:$0xff] (%p347_p1)  ;;  %v1001_v16 = vpack.c.bf16 (%p347_p1), %v372_v13, %v371_v12  ;;  %v455_v4 = vshrl.u32 (%p347_p1), %v454_v1, 7  ;;  %s1834_s13 = sand.u32 (%p347_p1), 1, %s1297_s11   ;;  %s1223_s27 = scalar_lea.vmem (%p347_p1), %s1748_s12, 1024 }
  0xc3   : > { %992 = vmatpush3.bf16.msra.mxu0 (%p347_p1), %v989_v3  ;;  %1029 = vmatpush3.bf16.msra.mxu1 (%p347_p1), %v989_v3  ;;  %vm408_vm0 = vcmp.eq.s32.totalorder (%p347_p1), %v1560_v14, 1  ;;  %vm409_vm1 = vcmp.eq.s32.totalorder (%p347_p1), %v1563_v15, 1  ;;  %v389_v17 = vld [vmem:[%s1471_s9] sm:$0xff] (%p347_p1)  ;;  %v390_v18 = vld [vmem:[%s1471_s9 + $0x8] sm:$0xff] (%p347_p1)  ;;  %v375_v27 = vld [vmem:[%s1798_s3 + $0x50] sm:$0xff] (%p347_p1)  ;;  %vm401_vm10 = vcmp.eq.s32.totalorder (%p347_p1), %v1563_v15, 0  ;;  %p1224_p2 = scmp.ne.s32.totalorder (%p347_p1), %s1748_s12, %s1223_s27 }
  0xc4   : > { %994 = vmatprep.subr.bf16.mxu0 (%p347_p1), %v993_v6  ;;  %1022 = vmatprep.subr.bf16.mxu1 (%p347_p1), %v993_v6  ;;  %v373_v19 = vld [vmem:[%s1798_s3 + $0x40] sm:$0xff] (%p347_p1)  ;;  %v374_v20 = vld [vmem:[%s1798_s3 + $0x48] sm:$0xff] (%p347_p1)  ;;  %v416_v21 = vsel (%p347_p1), %vm408_vm0, 1, %v1325_v5  ;;  %vm406_vm2 = vcmp.eq.s32.totalorder (%p347_p1), %v389_v17, 1  ;;  %v417_v24 = vsel (%p347_p1), %vm409_vm1, 1, %v1325_v5  ;;  %vm407_vm3 = vcmp.eq.s32.totalorder (%p347_p1), %v390_v18, 1 }
  0xc5   : > { %977 = vmatprep.mubr.f32.mxu0 (%p347_p1), %v357_v10  ;;  %983 = vmatprep.mubr.f32.mxu1 (%p347_p1), %v361_v11  ;;  %v1577_v22 = vld [vmem:[%s1471_s9 + $0x28] sm:$0xff] (%p347_p1)  ;;  %v414_v23 = vsel (%p347_p1), %vm406_vm2, 1, %v1325_v5  ;;  %v1005_v25 = vpack.c.bf16 (%p347_p1), %v374_v20, %v373_v19  ;;  %v1583_v26 = vld [vmem:[%s1471_s9 + $0x20] sm:$0xff] (%p347_p1)  ;;  %v376_v28 = vld [vmem:[%s1798_s3 + $0x58] sm:$0xff] (%p347_p1)  ;;  %v415_v30 = vsel (%p347_p1), %vm407_vm3, 1, %v1325_v5  ;;  %vm399_vm8 = vcmp.eq.s32.totalorder (%p347_p1), %v390_v18, 0 }
  0xc6   : > { %429 = vperm.xlu1 (%p347_p1), %1118, %v416_v21   ;;  %vm411_vm4 = vcmp.eq.s32.totalorder (%p347_p1), %v1577_v22, 1  ;;  %423 = vperm.xlu0 (%p347_p1), %1117, %v414_v23   ;;  %v1592_v29 = vld [vmem:[%s1471_s9 + $0x38] sm:$0xff] (%p347_p1)  ;;  %vm410_vm5 = vcmp.eq.s32.totalorder (%p347_p1), %v1583_v26, 1  ;;  %v1009_v32 = vpack.c.bf16 (%p347_p1), %v376_v28, %v375_v27  ;;  %v1599_v33 = vld [vmem:[%s1471_s9 + $0x30] sm:$0xff] (%p347_p1)  ;;  %v377_v34 = vld [vmem:[%s1798_s3 + $0x60] sm:$0xff] (%p347_p1)  ;;  %v471_v42 = vsel (%p347_p1), %vm399_vm8, 1, %v1325_v5 }
  0xc7   : > { %996 = vmatpush3.bf16.msra.mxu0 %v993_v6  ;;  %1030 = vmatpush3.bf16.msra.mxu1 %v993_v6  ;;  %v419_v31 = vsel %vm411_vm4, 1, %v1325_v5  ;;  %vm413_vm6 = vcmp.eq.s32.totalorder %v1592_v29, 1  ;;  %v378_v35 = vld [vmem:[%s1798_s3 + $0x68] sm:$0xff]  ;;  %v418_v36 = vsel %vm410_vm5, 1, %v1325_v5  ;;  %vm412_vm7 = vcmp.eq.s32.totalorder %v1599_v33, 1  ;;  %v379_v39 = vld [vmem:[%s1798_s3 + $0x70] sm:$0xff] }
  0xc8   : > { %998 = vmatprep.subr.bf16.mxu0 %v997_v9  ;;  %1023 = vmatprep.subr.bf16.mxu1 %v997_v9  ;;  %v421_v37 = vsel %vm413_vm6, 1, %v1325_v5  ;;  %v1013_v38 = vpack.c.bf16 %v378_v35, %v377_v34  ;;  %v380_v40 = vld [vmem:[%s1798_s3 + $0x78] sm:$0xff]  ;;  %v420_v41 = vsel %vm412_vm7, 1, %v1325_v5  ;;  %vm398_vm9 = vcmp.eq.s32.totalorder %v389_v17, 0  ;;  %v358_v47 = vld [vmem:[%s1549_s17 + $0x8] sm:$0xff]  ;;  %v359_v49 = vld [vmem:[%s1549_s17 + $0x10] sm:$0xff] }
  0xc9   : > { %v1017_v43 = vpack.c.bf16 %v380_v40, %v379_v39  ;;  %v470_v44 = vsel %vm398_vm9, 1, %v1325_v5  ;;  %v473_v45 = vsel %vm401_vm10, 1, %v1325_v5  ;;  %vm400_vm11 = vcmp.eq.s32.totalorder %v1560_v14, 0  ;;  %v362_v48 = vld [vmem:[%s1549_s17 + $0x28] sm:$0xff]  ;;  %v363_v50 = vld [vmem:[%s1549_s17 + $0x30] sm:$0xff]  ;;  %v360_v53 = vld [vmem:[%s1549_s17 + $0x18] sm:$0xff] }
  0xca   : > { %432 = vperm.xlu1 %1118, %v417_v24   ;;  %426 = vperm.xlu0 %1117, %v415_v30   ;;  %vm403_vm12 = vcmp.eq.s32.totalorder %v1577_v22, 0  ;;  %v472_v46 = vsel %vm400_vm11, 1, %v1325_v5  ;;  %vm402_vm13 = vcmp.eq.s32.totalorder %v1583_v26, 0  ;;  %vm405_vm14 = vcmp.eq.s32.totalorder %v1592_v29, 0  ;;  %v364_v54 = vld [vmem:[%s1549_s17 + $0x38] sm:$0xff]  ;;  %v382_v15 = vld [vmem:[#allocation6 + $0x8] sm:$0xff] }
  0xcb   : > { %1000 = vmatpush3.bf16.msra.mxu0 %v997_v9  ;;  %1031 = vmatpush3.bf16.msra.mxu1 %v997_v9  ;;  %v475_v51 = vsel %vm403_vm12, 1, %v1325_v5  ;;  %v474_v52 = vsel %vm402_vm13, 1, %v1325_v5  ;;  %vm404_vm15 = vcmp.eq.s32.totalorder %v1599_v33, 0  ;;  %v477_v55 = vsel %vm405_vm14, 1, %v1325_v5  ;;  %v381_v23 = vld [vmem:[#allocation6] sm:$0xff]  ;;  %v387_v40 = vld [vmem:[#allocation6 + $0x30] sm:$0xff] }
  0xcc   : > { %1002 = vmatprep.subr.bf16.mxu0 %v1001_v16  ;;  %1024 = vmatprep.subr.bf16.mxu1 %v1001_v16  ;;  %v476_v56 = vsel %vm404_vm15, 1, %v1325_v5  ;;  %v456_v6 = vsub.s32 1, %v455_v4  ;;  %v460_v7 = vsub.s32 2, %v455_v4  ;;  %v397_v5 = vld [vmem:[%s1799_s4] sm:$0x7]  ;;  %v512_v10 = vsub.s32 0, %v455_v4 }
  0xcd   : > { %v385_v24 = vld [vmem:[#allocation6 + $0x20] sm:$0xff]  ;;  %s1754_s2 = scalar_lea.sflag [#allocation8], %s1834_s13  ;;  %p1835_p4 = scmp.ne.s32.totalorder %s1821_s19, 0 }
  0xce   : > { %438 = vperm.xlu1 %1118, %v419_v31   ;;  %435 = vperm.xlu0 %1117, %v418_v36   ;;  %v1648_v11 = vrot.slane %v397_v5, %v456_v6  ;;  %v1650_v12 = vrot.slane %v397_v5, %v460_v7  ;;  %v1652_v17 = vrot.slane %v397_v5, %v512_v10  ;;  %s1326_s16 = smov [#allocation9]  }
  0xcf   : > { %1004 = vmatpush3.bf16.msra.mxu0 %v1001_v16  ;;  %1032 = vmatpush3.bf16.msra.mxu1 %v1001_v16  ;;  %v386_v16 = vld [vmem:[#allocation6 + $0x28] sm:$0xff]  ;;  %p1225_p8 = pnand %p1224_p2, %p1835_p4  ;;  %s1227_s26 = sshll.u32 %s1326_s16, 4  ;;  %s1228_s26 = int_to_ptr.vmem [resolvable:$false] %s1227_s26 }
  0xd0   : > { %1006 = vmatprep.subr.bf16.mxu0 %v1005_v25  ;;  %1025 = vmatprep.subr.bf16.mxu1 %v1005_v25  ;;  %s1229_s21 = scalar_lea.vmem %s1228_s26, 2048  ;;  %p1230_p12 = scmp.lt.s32.totalorder %s1748_s12, %s1228_s26 }
  0xd1   : > { %p1226_p9 = pneg %p1225_p8  ;;  %p1231_p13 = scmp.lt.s32.totalorder %s1229_s21, %s1223_s27 }
  0xd2   : > { %444 = vperm.xlu1 %1118, %v421_v37   ;;  %441 = vperm.xlu0 %1117, %v420_v41   ;;  %v384_v37 = vld [vmem:[#allocation6 + $0x18] sm:$0xff] }
  0xd3   : > { %1008 = vmatpush3.bf16.msra.mxu0 %v1005_v25  ;;  %1033 = vmatpush3.bf16.msra.mxu1 %v1005_v25  ;;  %p1232_p3 = por %p1231_p13, %p1230_p12 }
  0xd4   : > { %1010 = vmatprep.subr.bf16.mxu0 %v1009_v32  ;;  %1026 = vmatprep.subr.bf16.mxu1 %v1009_v32 }
  0xd5   : > { %p1233_p5 = pnand %p1232_p3, %p1226_p9 }
  0xd6   : > { %482 = vperm.xlu1 %1118, %v471_v42   ;;  %479 = vperm.xlu0 %1117, %v470_v44  }
  0xd7   : > { %1012 = vmatpush3.bf16.msra.mxu0 %v1009_v32  ;;  %1034 = vmatpush3.bf16.msra.mxu1 %v1009_v32 }
  0xd8   : > { %1014 = vmatprep.subr.bf16.mxu0 %v1013_v38  ;;  %1027 = vmatprep.subr.bf16.mxu1 %v1013_v38 }
  0xda   : > { %488 = vperm.xlu1 %1118, %v473_v45   ;;  %485 = vperm.xlu0 %1117, %v472_v46  }
  0xdb   : > { %1016 = vmatpush3.bf16.msra.mxu0 %v1013_v38  ;;  %1035 = vmatpush3.bf16.msra.mxu1 %v1013_v38 }
  0xdc   : > { %1018 = vmatprep.subr.bf16.mxu0 %v1017_v43  ;;  %1028 = vmatprep.subr.bf16.mxu1 %v1017_v43 }
  0xde   : > { %494 = vperm.xlu1 %1118, %v475_v51   ;;  %491 = vperm.xlu0 %1117, %v474_v52   ;;  %v383_v51 = vld [vmem:[#allocation6 + $0x10] sm:$0xff] }
  0xdf   : > { %1020 = vmatpush3.bf16.msra.mxu0 %v1017_v43  ;;  %1036 = vmatpush3.bf16.msra.mxu1 %v1017_v43 }
  0xe2   : > { %978 = vmatmul.mubr.f32.vlgmr.msra.gmra.mrb[0].mxu0 %v358_v47  ;;  %984 = vmatmul.mubr.f32.vlgmr.msra.gmra.mrb[0].mxu1 %v362_v48 }
  0xe3   : > { %980 = vmatprep.mubr.f32.mxu0 %v359_v49  ;;  %986 = vmatprep.mubr.f32.mxu1 %v363_v50 }
  0xe4   : > { %500 = vperm.xlu1 %1118, %v477_v55   ;;  %497 = vperm.xlu0 %1117, %v476_v56  }
  0xe6   : > { %981 = vmatmul.mubr.f32.gmra.mrb[2].mxu0 %v360_v53  ;;  %987 = vmatmul.mubr.f32.gmra.mrb[2].mxu1 %v364_v54 }
 0x145   : > { %v424_v57 = vpop.permute.xlu0 %423  ;;  %v1637_v58 = vpop.permute.xlu1 %429 }
 0x146   : > { %vm446_vm2 = vcmp.eq.s32.totalorder %v424_v57, 1  ;;  %vm448_vm10 = vcmp.eq.s32.totalorder %v1637_v58, 1 }
 0x147   : > { %v462_v20 = vsel %vm446_vm2, %v1648_v11, %v1650_v12  ;;  %v464_v52 = vsel %vm448_vm10, %v1648_v11, %v1650_v12 }
 0x149   : > { %v427_v59 = vpop.permute.xlu0 %426  ;;  %v433_v60 = vpop.permute.xlu1 %432 }
 0x14a   : > { %vm447_vm1 = vcmp.eq.s32.totalorder %v427_v59, 1  ;;  %vm449_vm6 = vcmp.eq.s32.totalorder %v433_v60, 1  ;;  %v388_v60 = vld [vmem:[#allocation6 + $0x38] sm:$0xff] }
 0x14b   : > { %v463_v19 = vsel %vm447_vm1, %v1648_v11, %v1650_v12  ;;  %v465_v41 = vsel %vm449_vm6, %v1648_v11, %v1650_v12 }
 0x14d   : > { %v436_v61 = vpop.permute.xlu0 %435  ;;  %v439_v62 = vpop.permute.xlu1 %438 }
 0x14e   : > { %vm451_vm0 = vcmp.eq.s32.totalorder %v439_v62, 1  ;;  %vm450_vm3 = vcmp.eq.s32.totalorder %v436_v61, 1 }
 0x14f   : > { %v467_v18 = vsel %vm451_vm0, %v1648_v11, %v1650_v12  ;;  %v466_v25 = vsel %vm450_vm3, %v1648_v11, %v1650_v12 }
 0x151   : > { %v442_v63 = vpop.permute.xlu0 %441  ;;  %v1639_v0 = vpop.permute.xlu1 %444 }
 0x152   : > { %vm452_vm7 = vcmp.eq.s32.totalorder %v442_v63, 1  ;;  %vm453_vm14 = vcmp.eq.s32.totalorder %v1639_v0, 1 }
 0x153   : > { %v468_v42 = vsel %vm452_vm7, %v1648_v11, %v1650_v12  ;;  %v469_v58 = vsel %vm453_vm14, %v1648_v11, %v1650_v12 }
 0x155   : > { %v480_v2 = vpop.permute.xlu0 %479  ;;  %v483_v3 = vpop.permute.xlu1 %482 }
 0x156   : > { %vm503_vm4 = vcmp.eq.s32.totalorder %v483_v3, 1  ;;  %vm502_vm8 = vcmp.eq.s32.totalorder %v480_v2, 1 }
 0x157   : > { %v515_v31 = vsel %vm503_vm4, %v1652_v17, %v463_v19  ;;  %v514_v46 = vsel %vm502_vm8, %v1652_v17, %v462_v20 }
 0x159   : > { %v1641_v8 = vpop.permute.xlu0 %485  ;;  %v1646_v9 = vpop.permute.xlu1 %488 }
 0x15a   : > { %vm505_vm11 = vcmp.eq.s32.totalorder %v1646_v9, 1  ;;  %vm504_vm13 = vcmp.eq.s32.totalorder %v1641_v8, 1 }
 0x15b   : > { %v517_v54 = vsel %vm505_vm11, %v1652_v17, %v465_v41  ;;  %v516_v61 = vsel %vm504_vm13, %v1652_v17, %v464_v52 }
 0x15d   : > { %v492_v13 = vpop.permute.xlu0 %491  ;;  %v495_v14 = vpop.permute.xlu1 %494 }
 0x15e   : > { %vm507_vm5 = vcmp.eq.s32.totalorder %v495_v14, 1  ;;  %vm506_vm9 = vcmp.eq.s32.totalorder %v492_v13, 1 }
 0x15f   : > { %v519_v30 = vsel %vm507_vm5, %v1652_v17, %v467_v18  ;;  %v518_v45 = vsel %vm506_vm9, %v1652_v17, %v466_v25 }
 0x163   : > { %v498_v32 = vpop.permute.xlu0 %497  ;;  %v501_v59 = vpop.permute.xlu1 %500 }
 0x164   : > { %vm508_vm12 = vcmp.eq.s32.totalorder %v498_v32, 1  ;;  %vm509_vm15 = vcmp.eq.s32.totalorder %v501_v59, 1 }
 0x165   : > { %v520_v53 = vsel %vm508_vm12, %v1652_v17, %v468_v42  ;;  %v521_v1 = vsel %vm509_vm15, %v1652_v17, %v469_v58 }
 0x1b5   : > { %v979_v21 = vpop.f32.mrb[0].mxu0  ;;  %v985_v22 = vpop.f32.mrb[0].mxu1 }
 0x1b6   : > { %v594_v26 = vadd.f32 %v979_v21, %v382_v15  ;;  %v614_v27 = vadd.f32 %v985_v22, %v386_v16  ;;  %v588_v28 = vpop.f32.mrb[1].mxu0  ;;  %v608_v29 = vpop.f32.mrb[1].mxu1 }
 0x1b7   : > { %v589_v33 = vadd.f32 %v588_v28, %v381_v23  ;;  %v609_v34 = vadd.f32 %v608_v29, %v385_v24 }
 0x1b8   : > { %v632_v35 = vadd.f32 %v614_v27, %v519_v30  ;;  %v628_v36 = vadd.f32 %v594_v26, %v515_v31 }
 0x1b9   : > { %v982_v38 = vpop.f32.mrb[2].mxu0  ;;  %v988_v39 = vpop.f32.mrb[2].mxu1  ;;  %v631_v49 = vadd.f32 %v609_v34, %v518_v45  ;;  %v627_v50 = vadd.f32 %v589_v33, %v514_v46 }
 0x1ba   : > { %645 = vadd.xlane.f32.xlu0 %v632_v35  ;;  %v618_v43 = vpop.f32.mrb[3].mxu1  ;;  %637 = vadd.xlane.f32.xlu1 %v628_v36  ;;  %v598_v44 = vpop.f32.mrb[3].mxu0  ;;  %v604_v47 = vadd.f32 %v982_v38, %v384_v37  ;;  %v624_v62 = vadd.f32 %v988_v39, %v388_v60 }
 0x1bb   : > { %v619_v48 = vadd.f32 %v618_v43, %v387_v40  ;;  %v599_v55 = vadd.f32 %v598_v44, %v383_v51 }
 0x1bc   : > { %v630_v57 = vadd.f32 %v604_v47, %v517_v54  ;;  %v634_v2 = vadd.f32 %v624_v62, %v521_v1 }
 0x1bd   : > { %v633_v56 = vadd.f32 %v619_v48, %v520_v53  ;;  %v629_v63 = vadd.f32 %v599_v55, %v516_v61 }
 0x1be   : > { %643 = vadd.xlane.f32.xlu1 %v631_v49  ;;  %635 = vadd.xlane.f32.xlu0 %v627_v50 }
 0x1c2   : > { %647 = vadd.xlane.f32.xlu1 %v633_v56  ;;  %641 = vadd.xlane.f32.xlu0 %v630_v57 }
 0x1c6   : > { %639 = vadd.xlane.f32.xlu0 %v629_v63 }
 0x1ca   : > { %649 = vadd.xlane.f32.xlu0 %v634_v2 }
 0x247   : > { %v646_v3 = vpop.xlane.xlu0 %645  ;;  %v638_v4 = vpop.xlane.xlu1 %637 }
 0x248   : > { %v657_v0 = vmul.f32 0.0078125, %v646_v3  ;;  %v653_v6 = vmul.f32 0.0078125, %v638_v4 }
 0x24a   : > { %v1689_v7 = vsub.f32 %v628_v36, %v653_v6  ;;  %v1691_v9 = vsub.f32 %v632_v35, %v657_v0 }
 0x24b   : > { %v644_v8 = vpop.xlane.xlu1 %643  ;;  %v636_v5 = vpop.xlane.xlu0 %635 }
 0x24c   : > { %v656_v10 = vmul.f32 0.0078125, %v644_v8  ;;  %v652_v11 = vmul.f32 0.0078125, %v636_v5  ;;  %v669_v12 = vmul.f32 %v1689_v7, %v1689_v7  ;;  %v673_v17 = vmul.f32 %v1691_v9, %v1691_v9 }
 0x24e   : > { %v1695_v13 = vsub.f32 %v627_v50, %v652_v11  ;;  %678 = vadd.xlane.f32.xlu0 %v669_v12  ;;  %v1697_v15 = vsub.f32 %v631_v49, %v656_v10  ;;  %v909_v50 = vld [vmem:[%s1800_s5] ss:$0 sm:$0xff] }
 0x24f   : > { %v642_v14 = vpop.xlane.xlu0 %641  ;;  %v648_v19 = vpop.xlane.xlu1 %647 }
 0x250   : > { %v655_v16 = vmul.f32 0.0078125, %v642_v14  ;;  %v668_v18 = vmul.f32 %v1695_v13, %v1695_v13  ;;  %v658_v22 = vmul.f32 0.0078125, %v648_v19  ;;  %v672_v24 = vmul.f32 %v1697_v15, %v1697_v15 }
 0x252   : > { %v1703_v20 = vsub.f32 %v630_v57, %v655_v16  ;;  %686 = vadd.xlane.f32.xlu0 %v673_v17  ;;  %676 = vadd.xlane.f32.xlu1 %v668_v18  ;;  %v1711_v28 = vsub.f32 %v633_v56, %v658_v22  ;;  %v910_v57 = vld [vmem:[%s1801_s6] ss:$0 sm:$0xff] }
 0x253   : > { %v640_v21 = vpop.xlane.xlu0 %639 }
 0x254   : > { %v654_v23 = vmul.f32 0.0078125, %v640_v21  ;;  %v671_v25 = vmul.f32 %v1703_v20, %v1703_v20  ;;  %v674_v32 = vmul.f32 %v1711_v28, %v1711_v28 }
 0x256   : > { %v1709_v26 = vsub.f32 %v629_v63, %v654_v23  ;;  %684 = vadd.xlane.f32.xlu1 %v672_v24  ;;  %682 = vadd.xlane.f32.xlu0 %v671_v25 }
 0x257   : > { %v650_v27 = vpop.xlane.xlu0 %649 }
 0x258   : > { %v659_v29 = vmul.f32 0.0078125, %v650_v27  ;;  %v670_v30 = vmul.f32 %v1709_v26, %v1709_v26 }
 0x25a   : > { %v1715_v31 = vsub.f32 %v634_v2, %v659_v29  ;;  %680 = vadd.xlane.f32.xlu1 %v670_v30 }
 0x25c   : > { %v675_v33 = vmul.f32 %v1715_v31, %v1715_v31 }
 0x25e   : > { %688 = vadd.xlane.f32.xlu1 %v674_v32  ;;  %690 = vadd.xlane.f32.xlu0 %v675_v33 }
 0x2db   : > { %v679_v34 = vpop.xlane.xlu0 %678 }
 0x2dc   : > { %v693_v35 = vmul.f32 0.0078125, %v679_v34 }
 0x2de   : > { %v701_v36 = vadd.f32 1e-12, %v693_v35 }
 0x2df   : > { %v677_v37 = vpop.xlane.xlu1 %676  ;;  %v687_v38 = vpop.xlane.xlu0 %686 }
 0x2e0   : > { %1119 = vrsqrt.f32 %v701_v36  ;;  %v692_v39 = vmul.f32 0.0078125, %v677_v37  ;;  %v697_v40 = vmul.f32 0.0078125, %v687_v38 }
 0x2e2   : > { %v700_v41 = vadd.f32 1e-12, %v692_v39  ;;  %v705_v42 = vadd.f32 1e-12, %v697_v40 }
 0x2e3   : > { %v685_v43 = vpop.xlane.xlu1 %684  ;;  %v683_v44 = vpop.xlane.xlu0 %682 }
 0x2e4   : > { %1121 = vrsqrt.f32 %v700_v41  ;;  %v696_v45 = vmul.f32 0.0078125, %v685_v43  ;;  %v695_v46 = vmul.f32 0.0078125, %v683_v44 }
 0x2e5   : > { %1123 = vrsqrt.f32 %v705_v42 }
 0x2e6   : > { %v704_v47 = vadd.f32 1e-12, %v696_v45  ;;  %v703_v48 = vadd.f32 1e-12, %v695_v46 }
 0x2e7   : > { %v681_v49 = vpop.xlane.xlu1 %680 }
 0x2e8   : > { %1125 = vrsqrt.f32 %v704_v47  ;;  %v694_v51 = vmul.f32 0.0078125, %v681_v49 }
 0x2e9   : > { %1127 = vrsqrt.f32 %v703_v48 }
 0x2ea   : > { %v1120_v52 = vpop.eup %1119  ;;  %v702_v53 = vadd.f32 1e-12, %v694_v51 }
 0x2eb   : > { %v724_v54 = vmul.f32 %v1120_v52, %v909_v50  ;;  %v689_v55 = vpop.xlane.xlu1 %688  ;;  %v691_v56 = vpop.xlane.xlu0 %690 }
 0x2ec   : > { %1129 = vrsqrt.f32 %v702_v53  ;;  %v698_v59 = vmul.f32 0.0078125, %v689_v55  ;;  %v699_v60 = vmul.f32 0.0078125, %v691_v56 }
 0x2ed   : > { %v732_v61 = vmul.f32 %v724_v54, %v1689_v7 }
 0x2ee   : > { %v1122_v58 = vpop.eup %1121  ;;  %v706_v62 = vadd.f32 1e-12, %v698_v59  ;;  %v707_v63 = vadd.f32 1e-12, %v699_v60 }
 0x2ef   : > { %v1124_v1 = vpop.eup %1123  ;;  %v747_v2 = vadd.f32 %v910_v57, %v732_v61  ;;  %v723_v3 = vmul.f32 %v1122_v58, %v909_v50 }
 0x2f0   : > { %v728_v4 = vmul.f32 %v1124_v1, %v909_v50  ;;  %1131 = vrsqrt.f32 %v706_v62 }
 0x2f1   : > { %755 = vst [vmem:[%s1475_s22 + $0x8] sm:$0xff] %v747_v2  ;;  %v731_v0 = vmul.f32 %v723_v3, %v1695_v13  ;;  %1133 = vrsqrt.f32 %v707_v63 }
 0x2f2   : > { %v1126_v6 = vpop.eup %1125  ;;  %v736_v8 = vmul.f32 %v728_v4, %v1691_v9 }
 0x2f3   : > { %v1128_v5 = vpop.eup %1127  ;;  %v746_v7 = vadd.f32 %v910_v57, %v731_v0  ;;  %v727_v10 = vmul.f32 %v1126_v6, %v909_v50 }
 0x2f4   : > { %v751_v11 = vadd.f32 %v910_v57, %v736_v8  ;;  %v726_v12 = vmul.f32 %v1128_v5, %v909_v50 }
 0x2f5   : > { %754 = vst [vmem:[%s1475_s22] sm:$0xff] %v746_v7  ;;  %v735_v14 = vmul.f32 %v727_v10, %v1697_v15 }
 0x2f6   : > { %v1130_v16 = vpop.eup %1129  ;;  %759 = vst [vmem:[%s1475_s22 + $0x28] sm:$0xff] %v751_v11  ;;  %v734_v13 = vmul.f32 %v726_v12, %v1703_v20 }
 0x2f7   : > { %v750_v17 = vadd.f32 %v910_v57, %v735_v14  ;;  %v725_v18 = vmul.f32 %v1130_v16, %v909_v50 }
 0x2f8   : > { %v749_v19 = vadd.f32 %v910_v57, %v734_v13 }
 0x2f9   : > { %758 = vst [vmem:[%s1475_s22 + $0x20] sm:$0xff] %v750_v17  ;;  %v733_v9 = vmul.f32 %v725_v18, %v1709_v26 }
 0x2fa   : > { %v1132_v21 = vpop.eup %1131  ;;  %757 = vst [vmem:[%s1475_s22 + $0x18] sm:$0xff] %v749_v19 }
 0x2fb   : > { %v1134_v22 = vpop.eup %1133  ;;  %v748_v23 = vadd.f32 %v910_v57, %v733_v9  ;;  %v729_v15 = vmul.f32 %v1132_v21, %v909_v50 }
 0x2fc   : > { %v730_v24 = vmul.f32 %v1134_v22, %v909_v50 }
 0x2fd   : > { %756 = vst [vmem:[%s1475_s22 + $0x10] sm:$0xff] %v748_v23  ;;  %v737_v20 = vmul.f32 %v729_v15, %v1711_v28 }
 0x2fe   : > { %v738_v25 = vmul.f32 %v730_v24, %v1715_v31 }
 0x2ff   : > { %v752_v27 = vadd.f32 %v910_v57, %v737_v20 }
 0x300   : > { %v753_v26 = vadd.f32 %v910_v57, %v738_v25 }
 0x301   : > { %760 = vst [vmem:[%s1475_s22 + $0x30] sm:$0xff] %v752_v27 }
 0x302   : > { %761 = vst [vmem:[%s1475_s22 + $0x38] sm:$0xff] %v753_v26 }
 0x303   : > { %1236 = shalt.err (!%p1233_p5)
}
 0x304   : > { %s1237_s22 = scalar_lea.hbm %s1746_s24, 1024  ;;  %s1241_s29 = scalar_lea.hbm %s1803_s8, 2048 }
 0x305   : > { %p1238_p7 = scmp.ne.s32.totalorder %s1746_s24, %s1237_s22  ;;  %p1242_p11 = scmp.lt.u32.totalorder %s1746_s24, %s1803_s8 }
 0x306   : > { %p1243_p0 = scmp.lt.u32.totalorder %s1241_s29, %s1237_s22  ;;  %p1245_p2 = scmp.lt.u32.totalorder %s1237_s22, %s1746_s24 }
 0x307   : > { %p1239_p6 = pnand %p1238_p7, %p1835_p4 }
 0x308   : > { %p1244_p1 = por %p1243_p0, %p1242_p11 }
 0x309   : > { %p1240_p10 = pneg %p1239_p6 }
 0x30a   : > { %p1246_p8 = por %p1245_p2, %p1244_p1 }
 0x30c   : > { %p1247_p9 = pnand %p1246_p8, %p1240_p10 }
 0x30e   : > { %1250 = shalt.err (!%p1247_p9)
}
 0x30f   : > { %s1327_s17 = smov 128   ;;  %s1328_s25 = smov 8  }
 0x310   : > { %1041 = dma.vmem_to_hbm [thread:$0]  (%p1835_p4), %s1748_s12, 1024, %s1746_s24, %s1754_s2, %s1327_s17, %s1327_s17, %s1328_s25  }
 0x311 PF: > { %s1836_s23 = sld [smem:[#allocation22_spill]]  ;;  %s1837_s30 = sld [smem:[#allocation20_spill]] }
 0x312   : > { %s1838_s14 = sld [smem:[#allocation25_spill]] }
 0x317   : > { %p1053_p12 = scmp.ge.s32.totalorder %s1836_s23, 2  ;;  %s791_s10 = sand.u32 1, %s1837_s30  }
 0x318   : > { %p1839_p13 = scmp.ne.s32.totalorder %s1838_s14, 0  ;;  %s792_s0 = scalar_lea.sflag [#allocation8], %s791_s10 }
 0x31a   : > { %p1048_p3 = pnand %p1053_p12, %p1839_p13 }
 0x31c   : > { %1288 = dma.done.wait (!%p1048_p3), %s792_s0, 1024  }
 0x31d   : > { %1290 = vsyncadd (!%p1048_p3), %s792_s0, 4294966272  ;;  %s1840_s12 = sld [smem:[#allocation23_spill]]  ;;  %s1841_s15 = sld [smem:[#allocation21_spill]] }
 0x31e   : > { %s1842_s0 = sld [smem:[#allocation24_spill]]  ;;  %s1843_s10 = smov %s1297_s11 }
 0x323   : > { %p25_p5 = scmp.ge.s32.totalorder %s1840_s12, 4   ;;  %s1844_s11 = smov %s1841_s15 }
 0x325   :  { %27 = sbr.rel (!%p25_p5) target bundleno = 20 (0x14), region = 162 }
 0x32c   :  { %797 = vsyncpa [#allocation7], 1 }
 0x32d   :  { %799 = vsyncpa [#allocation7 + $0x1], 1 }
 0x32e   :  { %800 = vsyncpa [#allocation8], 1 }
 0x32f   :  { %802 = vsyncpa [#allocation8 + $0x1], 1 }
 0x330   :  { %803 = vsyncmov [#allocation3] }
 0x333   :  { %s804_s19 = vpop.sfrf %803 }
 0x334   :  { %p916_p4 = scmp.ne.s32.totalorder %s804_s19, 0 }
 0x336   :  { %808 = shalt.err (%p916_p4)  }
 0x337   :  { %810 = vsyncmov [#allocation3 + $0x1] }
 0x33a   :  { %s811_s20 = vpop.sfrf %810 }
 0x33b   :  { %p917_p7 = scmp.ne.s32.totalorder %s811_s20, 0 }
 0x33d   :  { %815 = shalt.err (%p917_p7)  }

</bundles_post_ra>
